<compile_context>
chip_gen: v5e
topology: v5e:2x2
jax: 0.10.0
libtpu: 0.0.40
codegen_flags: <defaults>
</compile_context>

<pallas_src>
import jax
import jax.numpy as jnp
from jax.experimental import pallas as pl
from jax.experimental.pallas import tpu as pltpu


# ----------------------------- kernels -----------------------------------

def _hinge_kernel(t_ref, tr_ref, o_ref):
    # loss = max(1 - t + tr, 0), computed in f32, stored in output dtype.
    t = t_ref[...].astype(jnp.float32)
    tr = tr_ref[...].astype(jnp.float32)
    o_ref[...] = jnp.maximum(1.0 - t + tr, 0.0).astype(o_ref.dtype)


def _hinge_delt_kernel(t_ref, tr_ref, d_ref, o_ref):
    # loss = max(1 - (t - tr) * delt, 0), computed in f32, stored in output dtype.
    t = t_ref[...].astype(jnp.float32)
    tr = tr_ref[...].astype(jnp.float32)
    d = d_ref[...].astype(jnp.float32)
    o_ref[...] = jnp.maximum(1.0 - (t - tr) * d, 0.0).astype(o_ref.dtype)


# ----------------------------- helpers ------------------------------------

_PALLAS_MIN_ELEMENTS = 16384   # below this, XLA fusion beats kernel launch overhead
_MIN_GRID_STEPS = 4            # want >= 4 steps: pipeline overlap + v7x megacore sharding


def _vmem_budget():
    """(per_buffer_target_bytes, vmem_limit_bytes), generation-aware.

    2 MiB/buffer is the consensus safe-and-fast point across v5e/v6e/v7x for this
    mem-bound kernel (worst case footprint: 4 arrays x 2 bufs x 2 MiB = 16 MiB).
    The scoped-VMEM limit is raised explicitly so the v5e 16-MiB default can't bite.
    """
    try:
        phys = int(pltpu.get_tpu_info().vmem_capacity_bytes)
    except Exception:
        phys = 64 << 20  # conservative (v7x-class) if the query is unavailable
    if phys >= (128 << 20):          # v5e / v6e: 128 MiB physical VMEM
        return 2 << 20, 48 << 20
    return 2 << 20, 32 << 20         # v7x-class: 64 MiB physical, 32 MiB scoped


def _pick_lane_width(total):
    """Lane-dense column width C (multiple of 128) dividing `total`.

    Prefer the widest C that still leaves >= 8 * _MIN_GRID_STEPS rows (so the grid can
    have >= 4 steps of >= 8 rows); otherwise fall back to the widest C with >= 8 rows.
    """
    fallback = None
    for c in (4096, 2048, 1024, 512, 256, 128):
        if total % c == 0 and total // c >= 8:
            if fallback is None:
                fallback = c
            if total // c >= 8 * _MIN_GRID_STEPS:
                return c
    return fallback


def _pick_row_tile(R, lane_c, max_itemsize, target_bytes):
    """Row tile tb: byte-based (~target_bytes of the widest dtype per buffer),
    multiple of 8, and small enough that the grid has >= _MIN_GRID_STEPS steps
    whenever R allows it."""
    tb_cap = max(8, (target_bytes // (lane_c * max_itemsize)) // 8 * 8)
    tb_steps = max(8, (R // _MIN_GRID_STEPS) // 8 * 8)
    return min(tb_cap, tb_steps)


def _make_even_steps(R, tb):
    """Nudge tb down (8-row aligned, never below tb//2) so pl.cdiv(R, tb) is even,
    keeping both v7x TensorCores equally loaded on small grids."""
    n = pl.cdiv(R, tb)
    if n <= 1 or n % 2 == 0:
        return tb
    lo = max(8, (tb // 2) // 8 * 8)
    for cand in range(tb - 8, lo - 1, -8):
        if pl.cdiv(R, cand) % 2 == 0:
            return cand
    return tb


def _jnp_fallback(t, tr, delt, out_dtype):
    """Pure-XLA path: tiny shapes, non-128-divisible element counts, single-step grids,
    or delt layouts whose torch.squeeze broadcasting differs from a flat reshape."""
    if delt is None:
        return jnp.maximum(1.0 - t + tr, 0.0).astype(out_dtype)
    d = jnp.squeeze(delt)   # exact torch.squeeze semantics (incl. broadcasting)
    loss = jnp.maximum(1.0 - (t - tr) * d, 0.0).astype(out_dtype)
    return loss[..., None]  # torch.unsqueeze(loss, dim=-1)


# ----------------------------- wrapper ------------------------------------

def hinge_margin_loss(t, tr, delt=None, size_average=False):
    """Pallas implementation of HingeMarginLoss.forward.

    t, tr : same shape, e.g. [B, N]
    delt  : optional, typically [B, N, 1] (any layout whose squeeze matches t.shape
            takes the fast path; anything else uses the exact XLA fallback)
    returns: t.shape if delt is None else loss.shape + (1,)
    Note: `size_average` is accepted but ignored, matching the reference module.
    Note: arithmetic is done in f32 inside the kernel (TPU-native; f64 inputs would be
          computed at f32 precision on the Pallas path).
    """
    assert t.shape == tr.shape, "t and tr must have the same shape"

    out_dtype = (jnp.result_type(t, tr) if delt is None
                 else jnp.result_type(t, tr, delt))

    # delt fast path only when torch.squeeze(delt) lines up elementwise with t
    # (flat reshape of a contiguous array is then exactly torch.squeeze).
    delt_fast = False
    if delt is not None:
        squeezed_shape = tuple(d for d in delt.shape if d != 1)
        delt_fast = (squeezed_shape == t.shape)

    total = t.size
    orig_shape = t.shape
    lane_c = _pick_lane_width(total)

    if (total < _PALLAS_MIN_ELEMENTS or lane_c is None
            or (delt is not None and not delt_fast)):
        # TODO(synk): element counts not divisible by 128 (or exotic delt broadcasts)
        # use the fused XLA path; a padded Pallas path isn't worth the extra HBM copy
        # for a mem-bound 3-op kernel.
        return _jnp_fallback(t, tr, delt, out_dtype)

    R = total // lane_c

    itemsize = lambda d: jnp.dtype(d).itemsize
    dtypes = [t.dtype, tr.dtype, out_dtype] + ([delt.dtype] if delt is not None else [])
    max_itemsize = max(itemsize(d) for d in dtypes)

    target_bytes, vmem_limit = _vmem_budget()
    tb = _pick_row_tile(R, lane_c, max_itemsize, target_bytes)
    tb = _make_even_steps(R, tb)
    n_steps = pl.cdiv(R, tb)

    if n_steps < 2:
        # A single-step pallas_call has no DMA/compute overlap and leaves v7x's second
        # TensorCore idle; XLA's fused loop wins in that band.
        return _jnp_fallback(t, tr, delt, out_dtype)

    grid = (n_steps,)
    spec = pl.BlockSpec((tb, lane_c), lambda i: (i, 0))
    cparams = pltpu.CompilerParams(
        dimension_semantics=("parallel",),
        vmem_limit_bytes=vmem_limit,
    )

    n_bytes = total * (itemsize(t.dtype) + itemsize(tr.dtype) + itemsize(out_dtype))
    flops = 3 * total

    # Flatten to a lane-dense slab (metadata-only reshape of contiguous data).
    t2 = jnp.reshape(t, (R, lane_c))
    tr2 = jnp.reshape(tr, (R, lane_c))

    # NOTE: input_output_aliases is intentionally not used; out_dtype may differ from
    # t.dtype and donation is caller-dependent.

    if delt is None:
        out = pl.pallas_call(
            _hinge_kernel,
            out_shape=jax.ShapeDtypeStruct((R, lane_c), out_dtype),
            grid=grid,
            in_specs=[spec, spec],
            out_specs=spec,
            compiler_params=cparams,
            cost_estimate=pl.CostEstimate(
                flops=flops, transcendentals=0, bytes_accessed=n_bytes),
        )(t2, tr2)
        return jnp.reshape(out, orig_shape)
    else:
        # torch.squeeze(delt): same contiguous memory order as t -> flat reshape.
        # No dtype cast in the wrapper; the kernel upcasts to f32 internally.
        d2 = jnp.reshape(delt, (R, lane_c))
        out = pl.pallas_call(
            _hinge_delt_kernel,
            out_shape=jax.ShapeDtypeStruct((R, lane_c), out_dtype),
            grid=grid,
            in_specs=[spec, spec, spec],
            out_specs=spec,
            compiler_params=cparams,
            cost_estimate=pl.CostEstimate(
                flops=flops, transcendentals=0,
                bytes_accessed=n_bytes + total * itemsize(delt.dtype)),
        )(t2, tr2, d2)
        # torch.unsqueeze(loss, dim=-1) -- metadata glue outside the kernel so the
        # stored output block stays lane-dense.
        return jnp.reshape(out, orig_shape)[..., None]


# ----------------------------- main ----------------------------------------

if __name__ == "__main__":
    key = jax.random.PRNGKey(0)
    k1, k2, k3 = jax.random.split(key, 3)

    # Moderate shape that takes the tiled Pallas path with >= 4 (even) grid steps,
    # yet stays small (512 KiB per f32 array).
    B, N = 256, 512
    t = jax.random.normal(k1, (B, N), dtype=jnp.float32)
    tr = jax.random.normal(k2, (B, N), dtype=jnp.float32)
    delt = jax.random.normal(k3, (B, N, 1), dtype=jnp.float32)

    # branch 1: no delt
    loss1 = jax.block_until_ready(hinge_margin_loss(t, tr))
    ref1 = jnp.maximum(1.0 - t + tr, 0.0)
    assert loss1.shape == (B, N)
    assert jnp.allclose(loss1, ref1, atol=1e-6), "branch-1 mismatch"

    # branch 2: with delt
    loss2 = jax.block_until_ready(hinge_margin_loss(t, tr, delt=delt))
    ref2 = jnp.maximum(1.0 - (t - tr) * jnp.squeeze(delt, -1), 0.0)[..., None]
    assert loss2.shape == (B, N, 1)
    assert jnp.allclose(loss2, ref2, atol=1e-6), "branch-2 mismatch"

    # bf16 inputs: byte-based tiling keeps per-buffer DMA size constant in bytes.
    t16, tr16 = t.astype(jnp.bfloat16), tr.astype(jnp.bfloat16)
    loss3 = jax.block_until_ready(hinge_margin_loss(t16, tr16))
    ref3 = jnp.maximum(
        1.0 - t16.astype(jnp.float32) + tr16.astype(jnp.float32), 0.0
    ).astype(jnp.bfloat16)
    assert loss3.shape == (B, N) and loss3.dtype == jnp.bfloat16
    assert jnp.allclose(loss3.astype(jnp.float32), ref3.astype(jnp.float32),
                        atol=1e-2), "bf16 mismatch"

    # tiny-shape path (intentionally bypasses Pallas: launch overhead dominates)
    ts, trs, ds = t[:2, :32], tr[:2, :32], delt[:2, :32, :]
    small1 = jax.block_until_ready(hinge_margin_loss(ts, trs))
    assert jnp.allclose(small1, jnp.maximum(1.0 - ts + trs, 0.0), atol=1e-6)
    small2 = jax.block_until_ready(hinge_margin_loss(ts, trs, delt=ds))
    assert small2.shape == (2, 32, 1)
    assert jnp.allclose(
        small2, jnp.maximum(1.0 - (ts - trs) * jnp.squeeze(ds, -1), 0.0)[..., None],
        atol=1e-6)

    print("KERNEL_OK")
</pallas_src>

<mosaic_0001>
module attributes {stable_mosaic.version = 11 : i64} {
  func.func @_hinge_kernel(%arg0: i32, %arg1: memref<8x4096xf32, #tpu.memory_space<vmem>>, %arg2: memref<8x4096xf32, #tpu.memory_space<vmem>>, %arg3: memref<8x4096xf32, #tpu.memory_space<vmem>>) attributes {dimension_semantics = [#tpu.dimension_semantics<parallel>], iteration_bounds = array<i64: 4>, scalar_prefetch = 0 : i64, scratch_operands = 0 : i64, tpu.core_type = #tpu.core_type<tc>, window_params = [{transform_indices = @transform_0, window_bounds = array<i64: 8, 4096>}, {transform_indices = @transform_1, window_bounds = array<i64: 8, 4096>}, {transform_indices = @transform_2, window_bounds = array<i64: 8, 4096>}]} {
    %c0 = arith.constant 0 : index
    %c0_0 = arith.constant 0 : index
    %0 = vector.load %arg1[%c0, %c0_0] : memref<8x4096xf32, #tpu.memory_space<vmem>>, vector<8x4096xf32>
    %c0_1 = arith.constant 0 : index
    %c0_2 = arith.constant 0 : index
    %1 = vector.load %arg2[%c0_1, %c0_2] : memref<8x4096xf32, #tpu.memory_space<vmem>>, vector<8x4096xf32>
    %cst = arith.constant 1.000000e+00 : f32
    %2 = vector.broadcast %cst : f32 to vector<8x4096xf32>
    %3 = arith.subf %2, %0 : vector<8x4096xf32>
    %4 = arith.addf %3, %1 : vector<8x4096xf32>
    %cst_3 = arith.constant 0.000000e+00 : f32
    %5 = vector.broadcast %cst_3 : f32 to vector<8x4096xf32>
    %6 = arith.maximumf %4, %5 : vector<8x4096xf32>
    %c0_4 = arith.constant 0 : index
    %c0_5 = arith.constant 0 : index
    %7 = vector.load %arg3[%c0_4, %c0_5] : memref<8x4096xf32, #tpu.memory_space<vmem>>, vector<8x4096xf32>
    tpu.vector_store %arg3[%c0_4, %c0_5], %6 {strides = array<i32>} : memref<8x4096xf32, #tpu.memory_space<vmem>>, vector<8x4096xf32>,
    return
  }
  func.func @transform_0(%arg0: i32) -> (i32, i32) {
    %c0_i32 = arith.constant 0 : i32
    %c0_i32_0 = arith.constant 0 : i32
    return %arg0, %c0_i32 : i32, i32
  }
  func.func @transform_1(%arg0: i32) -> (i32, i32) {
    %c0_i32 = arith.constant 0 : i32
    %c0_i32_0 = arith.constant 0 : i32
    return %arg0, %c0_i32 : i32, i32
  }
  func.func @transform_2(%arg0: i32) -> (i32, i32) {
    %c0_i32 = arith.constant 0 : i32
    %c0_i32_0 = arith.constant 0 : i32
    return %arg0, %c0_i32 : i32, i32
  }
}

</mosaic_0001>

<bundles_post_ra>
// kernel: tpu_custom_call.1
= control target key start
LH: loop header
LB: loop body
LE: loop exit
PB: predicated region body
PF: predicated region fallthrough
CT: control target
= control target key end

     0   :  { %7 = vsyncpa [#allocation3], 0  ;;  %s989_s0 = inlined_call_operand.hbm [shape: f32[32,4096], index: 0, kind: input, shape index: {}]   ;;  %s990_s1 = inlined_call_operand.hbm [shape: f32[32,4096], index: 1, kind: input, shape index: {}]   ;;  %s991_s2 = inlined_call_operand.hbm [shape: f32[32,4096], index: 2, kind: output, shape index: {}]  }
   0x1   :  { %9 = vsyncpa [#allocation3 + $0x1], 0 }
   0x2   :  { %10 = vsyncpa [#allocation6], 0 }
   0x3   :  { %12 = vsyncpa [#allocation6 + $0x1], 0 }
   0x4   :  { %13 = vsyncpa [#allocation4], 0 }
   0x5   :  { %15 = vsyncpa [#allocation4 + $0x1], 0  ;;  %s723_s9 = smov 0   ;;  %s725_s10 = smov 0  }
   0x6   :  { %s727_s11 = smov 0   ;;  %s729_s12 = smov 0  }
   0x7 LB: > { %s744_s13 = sadd.s32 4294967295, %s706_s12   ;;  %s504_s14 = sadd.s32 4294967294, %s706_s12   ;;  %s706_s12 = sphi %s729_s12, %s1001_s12   ;;  %s702_s11 = sphi %s727_s11, %s1000_s11   ;;  %s698_s10 = sphi %s725_s10, %s999_s10   ;;  %s694_s9 = sphi %s723_s9, %s998_s9  }
   0x8   : > { %s748_s15 = sadd.s32 1, %s706_s12   ;;  %s28_s16 = sadd.s32 1, %s702_s11 }
   0x9   : > { %s25_s17 = ssub.s32 %s706_s12, %s748_s15  ;;  %p35_p0 = scmp.ne.s32.totalorder %s702_s11, %s698_s10 }
   0xa   : > { %p26_p1 = scmp.eq.s32.totalorder %s25_s17, 0  ;;  %p36_p2 = scmp.eq.s32.totalorder %s706_s12, 0 }
   0xb   : > { %p41_p3 = scmp.ne.s32.totalorder %s698_s10, %s694_s9  ;;  %p42_p4 = scmp.eq.s32.totalorder %s744_s13, 0 }
   0xc   : > { %s760_s18 = scalar_select %p26_p1, %s702_s11, %s28_s16  }
   0xd   : > { %p762_p5 = por %p36_p2, %p35_p0  ;;  %p766_p6 = por %p42_p4, %p41_p3 }
   0xe   : > { %p91_p7 = scmp.eq.s32.totalorder %s744_s13, 3  ;;  %p97_p8 = scmp.eq.s32.totalorder %s504_s14, 3 }
   0xf   : > { %p542_p9 = scmp.lt.s32.totalorder %s706_s12, 4  ;;  %s781_s23 = sand.u32 1, %s702_s11  }
  0x10   : > { %p772_p10 = por %p91_p7, %p35_p0  ;;  %p776_p11 = por %p97_p8, %p41_p3 }
  0x11   : > { %s522_s24 = sshll.u32 %s706_s12, 8  ;;  %s507_s25 = sshll.u32 %s781_s23, 8 }
  0x12   : > { %s126_s28 = scalar_lea.hbm %s989_s0, %s522_s24  ;;  %s121_s30 = scalar_lea.vmem [#allocation2], %s507_s25 }
  0x13   : > { %s128_s29 = sshll.u32 %s126_s28, 4  ;;  %s130_s3 = sshll.u32 %s121_s30, 4  ;;  %s129_s29 = int_to_ptr.hbm [resolvable:$true] %s128_s29  ;;  %s131_s3 = int_to_ptr.vmem [resolvable:$true] %s130_s3 }
  0x14   : > { %p790_p12 = pnand %p542_p9, %p762_p5  ;;  %p513_p13 = scmp.ge.s32.totalorder %s706_s12, 1 }
  0x15   : > { %p155_p0 = scmp.lt.s32.totalorder %s706_s12, 5  ;;  %s118_s5 = scalar_lea.sflag [#allocation3], %s781_s23 }
  0x16   : > { %s576_s6 = sshra.s32 %s129_s29, 4  ;;  %p580_p2 = pneg %p790_p12  ;;  %s577_s6 = int_to_ptr.hbm [resolvable:$true] %s576_s6 }
  0x17   : > { %s578_s7 = scalar_lea.hbm %s577_s6, 256  ;;  %s583_s16 = scalar_lea.hbm %s989_s0, 1024 }
  0x18   : > { %p579_p1 = scmp.ne.s32.totalorder %s577_s6, %s578_s7  ;;  %p584_p5 = scmp.lt.s32.totalorder %s577_s6, %s989_s0 }
  0x19   : > { %p585_p7 = scmp.lt.s32.totalorder %s583_s16, %s578_s7 }
  0x1a   : > { %p581_p3 = pnand %p580_p2, %p579_p1 }
  0x1b   : > { %p586_p8 = por %p585_p7, %p584_p5 }
  0x1c   : > { %p582_p4 = pneg %p581_p3 }
  0x1e   : > { %p587_p9 = pnand %p586_p8, %p582_p4 }
  0x20   : > { %590 = shalt.err (!%p587_p9)
}
  0x21   : > { %534 = dma.hbm_to_vmem [thread:$0]  (!%p790_p12), %s129_s29, 4096, %s131_s3, %s118_s5  }
  0x22   : > { %p814_p1 = pnand %p513_p13, %p155_p0  ;;  %s146_s30 = scalar_lea.hbm %s990_s1, %s522_s24 }
  0x23   : > { %s148_s6 = sshll.u32 %s146_s30, 4  ;;  %s141_s7 = scalar_lea.vmem [#allocation5], %s507_s25  ;;  %s149_s6 = int_to_ptr.hbm [resolvable:$true] %s148_s6 }
  0x24   : > { %s150_s8 = sshll.u32 %s141_s7, 4  ;;  %s138_s14 = scalar_lea.sflag [#allocation6], %s781_s23  ;;  %s151_s8 = int_to_ptr.vmem [resolvable:$true] %s150_s8 }
  0x25   : > { %s606_s16 = sshra.s32 %s149_s6, 4  ;;  %s613_s5 = scalar_lea.hbm %s990_s1, 1024  ;;  %s607_s16 = int_to_ptr.hbm [resolvable:$true] %s606_s16 }
  0x26   : > { %s608_s17 = scalar_lea.hbm %s607_s16, 256  ;;  %p614_p4 = scmp.lt.s32.totalorder %s607_s16, %s990_s1 }
  0x27   : > { %p609_p3 = scmp.ne.s32.totalorder %s607_s16, %s608_s17  ;;  %p615_p5 = scmp.lt.s32.totalorder %s613_s5, %s608_s17 }
  0x29   : > { %p611_p13 = pnand %p609_p3, %p580_p2  ;;  %p616_p7 = por %p615_p5, %p614_p4 }
  0x2b   : > { %p612_p0 = pneg %p611_p13 }
  0x2d   : > { %p617_p8 = pnand %p616_p7, %p612_p0 }
  0x2f   : > { %620 = shalt.err (!%p617_p8)
}
  0x30   : > { %537 = dma.hbm_to_vmem [thread:$0]  (!%p790_p12), %s149_s6, 4096, %s151_s8, %s138_s14  }
  0x31   : > { %159 = sbr.rel (%p814_p1) target bundleno = 98 (0x62), region = 28  ;;  %s836_s23 = sand.u32 (!%p814_p1), 1, %s698_s10  }
  0x32   : > { %s839_s25 = sshll.u32 (!%p814_p1), %s836_s23, 8  ;;  %s162_s27 = scalar_lea.sflag (!%p814_p1), [#allocation3], %s836_s23 }
  0x33   : > { %s843_s28 = scalar_lea.vmem (!%p814_p1), [#allocation2], %s839_s25 }
  0x36   : > { %681 = dma.done.wait (%p766_p6), %s162_s27, 4096  }
  0x37   : > { %683 = vsyncadd (%p766_p6), %s162_s27, 4294963200  ;;  %s172_s4 = scalar_lea.sflag [#allocation6], %s836_s23  ;;  %s851_s26 = scalar_lea.vmem [#allocation5], %s839_s25 }
  0x38   : > { %685 = dma.done.wait (%p766_p6), %s172_s4, 4096  }
  0x39   : > { %687 = vsyncadd (%p766_p6), %s172_s4, 4294963200  ;;  %v202_v0 = vld [vmem:[%s843_s28] sm:$0xff]  ;;  %v203_v2 = vld [vmem:[%s843_s28 + $0x8] sm:$0xff]  ;;  %s879_s20 = scalar_lea.vmem [#allocation7], %s839_s25  ;;  %s524_s30 = sshll.u32 %s744_s13, 8 }
  0x3a   : > { %v234_v1 = vld [vmem:[%s851_s26] sm:$0xff]  ;;  %v266_v3 = vsub.f32 1.0, %v202_v0  ;;  %v235_v4 = vld [vmem:[%s851_s26 + $0x8] sm:$0xff]  ;;  %v267_v5 = vsub.f32 1.0, %v203_v2  ;;  %v204_v6 = vld [vmem:[%s843_s28 + $0x10] sm:$0xff]  ;;  %s406_s8 = scalar_lea.hbm %s991_s2, %s524_s30  ;;  %s408_s13 = sshll.u32 %s879_s20, 4  ;;  %s409_s13 = int_to_ptr.vmem [resolvable:$true] %s408_s13 }
  0x3b   : > { %v236_v7 = vld [vmem:[%s851_s26 + $0x10] sm:$0xff]  ;;  %v268_v8 = vsub.f32 1.0, %v204_v6  ;;  %v205_v9 = vld [vmem:[%s843_s28 + $0x18] sm:$0xff]  ;;  %v206_v11 = vld [vmem:[%s843_s28 + $0x20] sm:$0xff]  ;;  %s410_s14 = sshll.u32 %s406_s8, 4  ;;  %s395_s16 = scalar_lea.sflag [#allocation4], %s836_s23  ;;  %s411_s14 = int_to_ptr.hbm [resolvable:$true] %s410_s14 }
  0x3c   : > { %v237_v10 = vld [vmem:[%s851_s26 + $0x18] sm:$0xff]  ;;  %v298_v12 = vadd.f32 %v266_v3, %v234_v1  ;;  %v299_v13 = vadd.f32 %v267_v5, %v235_v4  ;;  %v269_v14 = vsub.f32 1.0, %v205_v9  ;;  %v238_v15 = vld [vmem:[%s851_s26 + $0x20] sm:$0xff]  ;;  %v270_v16 = vsub.f32 1.0, %v206_v11  ;;  %v207_v17 = vld [vmem:[%s843_s28 + $0x28] sm:$0xff]  ;;  %s650_s17 = sshra.s32 %s411_s14, 4  ;;  %s651_s17 = int_to_ptr.hbm [resolvable:$true] %s650_s17 }
  0x3d   : > { %v239_v18 = vld [vmem:[%s851_s26 + $0x28] sm:$0xff]  ;;  %v300_v19 = vadd.f32 %v268_v8, %v236_v7  ;;  %v271_v20 = vsub.f32 1.0, %v207_v17  ;;  %v208_v21 = vld [vmem:[%s843_s28 + $0x30] sm:$0xff]  ;;  %v209_v23 = vld [vmem:[%s843_s28 + $0x38] sm:$0xff]  ;;  %s652_s29 = scalar_lea.hbm %s651_s17, 256  ;;  %s656_s19 = scalar_lea.hbm %s991_s2, 1024 }
  0x3e   : > { %v240_v22 = vld [vmem:[%s851_s26 + $0x30] sm:$0xff]  ;;  %v330_v24 = vmax.f32 %v298_v12, 0.0  ;;  %v331_v25 = vmax.f32 %v299_v13, 0.0  ;;  %v301_v26 = vadd.f32 %v269_v14, %v237_v10  ;;  %v302_v27 = vadd.f32 %v270_v16, %v238_v15  ;;  %v241_v28 = vld [vmem:[%s851_s26 + $0x38] sm:$0xff]  ;;  %v210_v29 = vld [vmem:[%s843_s28 + $0x40] sm:$0xff]  ;;  %p653_p6 = scmp.ne.s32.totalorder %s651_s17, %s652_s29  ;;  %p657_p9 = scmp.lt.s32.totalorder %s651_s17, %s991_s2 }
  0x3f   : > { %v242_v30 = vld [vmem:[%s851_s26 + $0x40] sm:$0xff]  ;;  %v332_v31 = vmax.f32 %v300_v19, 0.0  ;;  %v303_v32 = vadd.f32 %v271_v20, %v239_v18  ;;  %v272_v33 = vsub.f32 1.0, %v208_v21  ;;  %v273_v34 = vsub.f32 1.0, %v209_v23  ;;  %v211_v35 = vld [vmem:[%s843_s28 + $0x48] sm:$0xff]  ;;  %v212_v37 = vld [vmem:[%s843_s28 + $0x50] sm:$0xff]  ;;  %p658_p1 = scmp.lt.s32.totalorder %s656_s19, %s652_s29 }
  0x40   : > { %v243_v36 = vld [vmem:[%s851_s26 + $0x48] sm:$0xff]  ;;  %362 = vst [vmem:[%s879_s20] sm:$0xff] %v330_v24  ;;  %v333_v38 = vmax.f32 %v301_v26, 0.0  ;;  %v334_v39 = vmax.f32 %v302_v27, 0.0  ;;  %v274_v40 = vsub.f32 1.0, %v210_v29  ;;  %v275_v41 = vsub.f32 1.0, %v211_v35  ;;  %v244_v42 = vld [vmem:[%s851_s26 + $0x50] sm:$0xff]  ;;  %p654_p12 = pnand %p653_p6, %p772_p10 }
  0x41   : > { %v213_v43 = vld [vmem:[%s843_s28 + $0x58] sm:$0xff]  ;;  %363 = vst [vmem:[%s879_s20 + $0x8] sm:$0xff] %v331_v25  ;;  %v335_v44 = vmax.f32 %v303_v32, 0.0  ;;  %v304_v45 = vadd.f32 %v272_v33, %v240_v22  ;;  %v305_v46 = vadd.f32 %v273_v34, %v241_v28  ;;  %v276_v47 = vsub.f32 1.0, %v212_v37  ;;  %v214_v49 = vld [vmem:[%s843_s28 + $0x60] sm:$0xff]  ;;  %v215_v55 = vld [vmem:[%s843_s28 + $0x68] sm:$0xff]  ;;  %p659_p3 = por %p658_p1, %p657_p9 }
  0x42   : > { %v245_v48 = vld [vmem:[%s851_s26 + $0x58] sm:$0xff]  ;;  %v246_v50 = vld [vmem:[%s851_s26 + $0x60] sm:$0xff]  ;;  %364 = vst [vmem:[%s879_s20 + $0x10] sm:$0xff] %v332_v31  ;;  %v306_v51 = vadd.f32 %v274_v40, %v242_v30  ;;  %v307_v52 = vadd.f32 %v275_v41, %v243_v36  ;;  %v277_v53 = vsub.f32 1.0, %v213_v43  ;;  %v278_v54 = vsub.f32 1.0, %v214_v49  ;;  %v247_v56 = vld [vmem:[%s851_s26 + $0x68] sm:$0xff]  ;;  %p655_p2 = pneg %p654_p12 }
  0x43   : > { %v216_v57 = vld [vmem:[%s843_s28 + $0x70] sm:$0xff]  ;;  %365 = vst [vmem:[%s879_s20 + $0x18] sm:$0xff] %v333_v38  ;;  %v336_v58 = vmax.f32 %v304_v45, 0.0  ;;  %v337_v59 = vmax.f32 %v305_v46, 0.0  ;;  %v308_v60 = vadd.f32 %v276_v47, %v244_v42  ;;  %v279_v61 = vsub.f32 1.0, %v215_v55  ;;  %v217_v62 = vld [vmem:[%s843_s28 + $0x78] sm:$0xff] }
  0x44   : > { %366 = vst [vmem:[%s879_s20 + $0x20] sm:$0xff] %v334_v39  ;;  %v338_v63 = vmax.f32 %v306_v51, 0.0  ;;  %v309_v0 = vadd.f32 %v277_v53, %v245_v48  ;;  %v310_v1 = vadd.f32 %v278_v54, %v246_v50  ;;  %v248_v2 = vld [vmem:[%s851_s26 + $0x70] sm:$0xff]  ;;  %v249_v3 = vld [vmem:[%s851_s26 + $0x78] sm:$0xff]  ;;  %v218_v4 = vld [vmem:[%s843_s28 + $0x80] sm:$0xff]  ;;  %v339_v5 = vmax.f32 %v307_v52, 0.0  ;;  %p660_p13 = pnand %p659_p3, %p655_p2 }
  0x45   : > { %367 = vst [vmem:[%s879_s20 + $0x28] sm:$0xff] %v335_v44  ;;  %v311_v6 = vadd.f32 %v279_v61, %v247_v56  ;;  %v280_v7 = vsub.f32 1.0, %v216_v57  ;;  %v281_v8 = vsub.f32 1.0, %v217_v62  ;;  %v250_v9 = vld [vmem:[%s851_s26 + $0x80] sm:$0xff]  ;;  %v219_v10 = vld [vmem:[%s843_s28 + $0x88] sm:$0xff]  ;;  %v340_v11 = vmax.f32 %v308_v60, 0.0 }
  0x46   : > { %368 = vst [vmem:[%s879_s20 + $0x30] sm:$0xff] %v336_v58  ;;  %v282_v12 = vsub.f32 1.0, %v218_v4  ;;  %v251_v13 = vld [vmem:[%s851_s26 + $0x88] sm:$0xff]  ;;  %v283_v14 = vsub.f32 1.0, %v219_v10  ;;  %v220_v15 = vld [vmem:[%s843_s28 + $0x90] sm:$0xff]  ;;  %v341_v16 = vmax.f32 %v309_v0, 0.0 }
  0x47   : > { %369 = vst [vmem:[%s879_s20 + $0x38] sm:$0xff] %v337_v59  ;;  %v312_v17 = vadd.f32 %v280_v7, %v248_v2  ;;  %v313_v18 = vadd.f32 %v281_v8, %v249_v3  ;;  %v252_v19 = vld [vmem:[%s851_s26 + $0x90] sm:$0xff]  ;;  %v284_v20 = vsub.f32 1.0, %v220_v15  ;;  %v221_v21 = vld [vmem:[%s843_s28 + $0x98] sm:$0xff]  ;;  %v342_v22 = vmax.f32 %v310_v1, 0.0  ;;  %v222_v26 = vld [vmem:[%s843_s28 + $0xa0] sm:$0xff] }
  0x48   : > { %370 = vst [vmem:[%s879_s20 + $0x40] sm:$0xff] %v338_v63  ;;  %v314_v23 = vadd.f32 %v282_v12, %v250_v9  ;;  %v253_v24 = vld [vmem:[%s851_s26 + $0x98] sm:$0xff]  ;;  %v285_v25 = vsub.f32 1.0, %v221_v21  ;;  %v223_v27 = vld [vmem:[%s843_s28 + $0xa8] sm:$0xff]  ;;  %v343_v28 = vmax.f32 %v311_v6, 0.0  ;;  %v315_v29 = vadd.f32 %v283_v14, %v251_v13  ;;  %v254_v30 = vld [vmem:[%s851_s26 + $0xa0] sm:$0xff] }
  0x49   : > { %371 = vst [vmem:[%s879_s20 + $0x48] sm:$0xff] %v339_v5  ;;  %v286_v31 = vsub.f32 1.0, %v222_v26  ;;  %v224_v32 = vld [vmem:[%s843_s28 + $0xb0] sm:$0xff]  ;;  %v344_v33 = vmax.f32 %v312_v17, 0.0  ;;  %v316_v34 = vadd.f32 %v284_v20, %v252_v19  ;;  %v255_v35 = vld [vmem:[%s851_s26 + $0xa8] sm:$0xff]  ;;  %v287_v36 = vsub.f32 1.0, %v223_v27 }
  0x4a   : > { %372 = vst [vmem:[%s879_s20 + $0x50] sm:$0xff] %v340_v11  ;;  %v225_v37 = vld [vmem:[%s843_s28 + $0xb8] sm:$0xff]  ;;  %v345_v38 = vmax.f32 %v313_v18, 0.0  ;;  %v317_v39 = vadd.f32 %v285_v25, %v253_v24  ;;  %v256_v40 = vld [vmem:[%s851_s26 + $0xb0] sm:$0xff]  ;;  %v288_v41 = vsub.f32 1.0, %v224_v32  ;;  %v226_v43 = vld [vmem:[%s843_s28 + $0xc0] sm:$0xff] }
  0x4b   : > { %373 = vst [vmem:[%s879_s20 + $0x58] sm:$0xff] %v341_v16  ;;  %v289_v42 = vsub.f32 1.0, %v225_v37  ;;  %v346_v44 = vmax.f32 %v314_v23, 0.0  ;;  %v318_v45 = vadd.f32 %v286_v31, %v254_v30  ;;  %v257_v46 = vld [vmem:[%s851_s26 + $0xb8] sm:$0xff]  ;;  %v290_v47 = vsub.f32 1.0, %v226_v43  ;;  %v227_v48 = vld [vmem:[%s843_s28 + $0xc8] sm:$0xff] }
  0x4c   : > { %374 = vst [vmem:[%s879_s20 + $0x60] sm:$0xff] %v342_v22  ;;  %v347_v49 = vmax.f32 %v315_v29, 0.0  ;;  %v319_v50 = vadd.f32 %v287_v36, %v255_v35  ;;  %v258_v51 = vld [vmem:[%s851_s26 + $0xc0] sm:$0xff]  ;;  %v291_v52 = vsub.f32 1.0, %v227_v48  ;;  %v228_v53 = vld [vmem:[%s843_s28 + $0xd0] sm:$0xff]  ;;  %v229_v54 = vld [vmem:[%s843_s28 + $0xd8] sm:$0xff]  ;;  %v320_v56 = vadd.f32 %v288_v41, %v256_v40 }
  0x4d   : > { %375 = vst [vmem:[%s879_s20 + $0x68] sm:$0xff] %v343_v28  ;;  %v348_v55 = vmax.f32 %v316_v34, 0.0  ;;  %v259_v57 = vld [vmem:[%s851_s26 + $0xc8] sm:$0xff]  ;;  %v292_v58 = vsub.f32 1.0, %v228_v53  ;;  %v230_v59 = vld [vmem:[%s843_s28 + $0xe0] sm:$0xff]  ;;  %v349_v60 = vmax.f32 %v317_v39, 0.0  ;;  %v321_v61 = vadd.f32 %v289_v42, %v257_v46 }
  0x4e   : > { %376 = vst [vmem:[%s879_s20 + $0x70] sm:$0xff] %v344_v33  ;;  %v260_v62 = vld [vmem:[%s851_s26 + $0xd0] sm:$0xff]  ;;  %v293_v63 = vsub.f32 1.0, %v229_v54  ;;  %v231_v0 = vld [vmem:[%s843_s28 + $0xe8] sm:$0xff]  ;;  %v350_v1 = vmax.f32 %v318_v45, 0.0  ;;  %v322_v2 = vadd.f32 %v290_v47, %v258_v51  ;;  %v261_v3 = vld [vmem:[%s851_s26 + $0xd8] sm:$0xff]  ;;  %v323_v7 = vadd.f32 %v291_v52, %v259_v57 }
  0x4f   : > { %377 = vst [vmem:[%s879_s20 + $0x78] sm:$0xff] %v345_v38  ;;  %v294_v4 = vsub.f32 1.0, %v230_v59  ;;  %v232_v5 = vld [vmem:[%s843_s28 + $0xf0] sm:$0xff]  ;;  %v351_v6 = vmax.f32 %v319_v50, 0.0  ;;  %v262_v8 = vld [vmem:[%s851_s26 + $0xe0] sm:$0xff]  ;;  %v295_v9 = vsub.f32 1.0, %v231_v0  ;;  %v324_v12 = vadd.f32 %v292_v58, %v260_v62 }
  0x50   : > { %378 = vst [vmem:[%s879_s20 + $0x80] sm:$0xff] %v346_v44  ;;  %v233_v10 = vld [vmem:[%s843_s28 + $0xf8] sm:$0xff]  ;;  %v352_v11 = vmax.f32 %v320_v56, 0.0  ;;  %v263_v13 = vld [vmem:[%s851_s26 + $0xe8] sm:$0xff]  ;;  %v296_v14 = vsub.f32 1.0, %v232_v5  ;;  %v353_v15 = vmax.f32 %v321_v61, 0.0  ;;  %v325_v16 = vadd.f32 %v293_v63, %v261_v3 }
  0x51   : > { %379 = vst [vmem:[%s879_s20 + $0x88] sm:$0xff] %v347_v49  ;;  %v264_v17 = vld [vmem:[%s851_s26 + $0xf0] sm:$0xff]  ;;  %v297_v18 = vsub.f32 1.0, %v233_v10  ;;  %v354_v19 = vmax.f32 %v322_v2, 0.0  ;;  %v326_v20 = vadd.f32 %v294_v4, %v262_v8  ;;  %v265_v21 = vld [vmem:[%s851_s26 + $0xf8] sm:$0xff]  ;;  %v355_v22 = vmax.f32 %v323_v7, 0.0 }
  0x52   : > { %380 = vst [vmem:[%s879_s20 + $0x90] sm:$0xff] %v348_v55  ;;  %v327_v23 = vadd.f32 %v295_v9, %v263_v13  ;;  %v356_v24 = vmax.f32 %v324_v12, 0.0  ;;  %v328_v25 = vadd.f32 %v296_v14, %v264_v17  ;;  %v357_v26 = vmax.f32 %v325_v16, 0.0 }
  0x53   : > { %381 = vst [vmem:[%s879_s20 + $0x98] sm:$0xff] %v349_v60  ;;  %v329_v27 = vadd.f32 %v297_v18, %v265_v21  ;;  %v358_v28 = vmax.f32 %v326_v20, 0.0 }
  0x54   : > { %382 = vst [vmem:[%s879_s20 + $0xa0] sm:$0xff] %v350_v1  ;;  %v359_v29 = vmax.f32 %v327_v23, 0.0  ;;  %v360_v30 = vmax.f32 %v328_v25, 0.0 }
  0x55   : > { %383 = vst [vmem:[%s879_s20 + $0xa8] sm:$0xff] %v351_v6  ;;  %v361_v31 = vmax.f32 %v329_v27, 0.0 }
  0x56   : > { %384 = vst [vmem:[%s879_s20 + $0xb0] sm:$0xff] %v352_v11 }
  0x57   : > { %385 = vst [vmem:[%s879_s20 + $0xb8] sm:$0xff] %v353_v15 }
  0x58   : > { %386 = vst [vmem:[%s879_s20 + $0xc0] sm:$0xff] %v354_v19 }
  0x59   : > { %387 = vst [vmem:[%s879_s20 + $0xc8] sm:$0xff] %v355_v22 }
  0x5a   : > { %388 = vst [vmem:[%s879_s20 + $0xd0] sm:$0xff] %v356_v24 }
  0x5b   : > { %389 = vst [vmem:[%s879_s20 + $0xd8] sm:$0xff] %v357_v26 }
  0x5c   : > { %390 = vst [vmem:[%s879_s20 + $0xe0] sm:$0xff] %v358_v28 }
  0x5d   : > { %391 = vst [vmem:[%s879_s20 + $0xe8] sm:$0xff] %v359_v29 }
  0x5e   : > { %392 = vst [vmem:[%s879_s20 + $0xf0] sm:$0xff] %v360_v30 }
  0x5f   : > { %393 = vst [vmem:[%s879_s20 + $0xf8] sm:$0xff] %v361_v31 }
  0x60   : > { %663 = shalt.err (!%p660_p13)
}
  0x61   : > { %529 = dma.vmem_to_hbm [thread:$0]  (%p772_p10), %s409_s13, 4096, %s411_s14, %s395_s16  }
  0x62 PF: > { %p543_p0 = scmp.ge.s32.totalorder %s706_s12, 2  ;;  %s422_s23 = sand.u32 1, %s694_s9  }
  0x63   : > { %s423_s27 = scalar_lea.sflag [#allocation4], %s422_s23 }
  0x64   : > { %p539_p4 = pnand %p543_p0, %p776_p11 }
  0x66   : > { %p540_p5 = pneg %p539_p4 }
  0x68   : > { %689 = dma.done.wait (%p540_p5), %s423_s27, 4096  }
  0x69   : > { %691 = vsyncadd (%p540_p5), %s423_s27, 4294963200  ;;  %p18_p7 = scmp.ge.s32.totalorder %s748_s15, 6   ;;  %s998_s9 = smov %s698_s10 }
  0x6a   : > { %s999_s10 = smov %s702_s11  ;;  %s1000_s11 = smov %s760_s18 }
  0x6b   : > { %s1001_s12 = smov %s748_s15  ;;  %20 = sbr.rel (!%p18_p7) target bundleno = 7 (0x7), region = 86 }
  0x70   :  { %429 = vsyncpa [#allocation3], 1 }
  0x71   :  { %431 = vsyncpa [#allocation3 + $0x1], 1 }
  0x72   :  { %432 = vsyncpa [#allocation6], 1 }
  0x73   :  { %434 = vsyncpa [#allocation6 + $0x1], 1 }
  0x74   :  { %435 = vsyncpa [#allocation4], 1 }
  0x75   :  { %437 = vsyncpa [#allocation4 + $0x1], 1 }

</bundles_post_ra>
